<compile_context>
chip_gen: v7x
topology: tpu7x:2x2x1
jax: 0.10.0
libtpu: 0.0.40
codegen_flags: <defaults>
</compile_context>

<pallas_src>
import math

import jax
import jax.numpy as jnp
from jax.experimental import pallas as pl
from jax.experimental.pallas import tpu as pltpu

F32 = jnp.float32
HEAD_PAD = 128  # lane-dense padded width for the tiny policy/value head outputs


# ------------------------------------------------------------------ kernel-side helpers

def _layernorm(z, gamma, beta, eps=1e-5):
    mu = jnp.mean(z, axis=-1, keepdims=True)
    var = jnp.mean((z - mu) ** 2, axis=-1, keepdims=True)
    return (z - mu) * jax.lax.rsqrt(var + eps) * gamma + beta


def _mha(xf, cf, w, b, *, batch, sq, sk, heads, head_dim):
    """Multi-head attention on flattened activations.

    xf: (batch*sq, D) queries;  cf: (batch*sk, D) keys/values.
    w:  (4, D, D) stacked [Wq, Wk, Wv, Wo];  b: (4, 1, D) stacked biases.
    Heads use B-batched contractions; the output projection is folded per head
    (sum_h attn_h @ Wo_h), so no lane-dim concatenation is ever emitted.
    """
    q = jnp.dot(xf, w[0], preferred_element_type=F32) + b[0]
    k = jnp.dot(cf, w[1], preferred_element_type=F32) + b[1]
    v = jnp.dot(cf, w[2], preferred_element_type=F32) + b[2]
    scale = 1.0 / math.sqrt(head_dim)
    out = None
    for h in range(heads):                      # static, heads is tiny
        lo = h * head_dim
        hi = lo + head_dim
        qh = q[:, lo:hi].reshape(batch, sq, head_dim)
        kh = k[:, lo:hi].reshape(batch, sk, head_dim)
        vh = v[:, lo:hi].reshape(batch, sk, head_dim)
        s = jnp.einsum('bqd,bkd->bqk', qh, kh,
                       preferred_element_type=F32) * scale
        s = s - jnp.max(s, axis=-1, keepdims=True)
        p = jnp.exp(s)
        p = p * pl.reciprocal(jnp.sum(p, axis=-1, keepdims=True), approx=True)
        oh = jnp.einsum('bqk,bkd->bqd', p, vh, preferred_element_type=F32)
        contrib = jnp.dot(oh.reshape(batch * sq, head_dim), w[3][lo:hi, :],
                          preferred_element_type=F32)
        out = contrib if out is None else out + contrib
    return out + b[3]


# --------------------------------------------------------------------------- kernels

def make_encoder_stack_kernel(batch, seq, heads, head_dim):
    """Whole encoder stack: grid axis = layer, state kept in VMEM scratch."""
    def kernel(x_ref, aw_ref, ab_ref, lng_ref, lnb_ref,
               w1_ref, b1_ref, w2_ref, b2_ref, o_ref, state_ref):
        layer = pl.program_id(0)

        @pl.when(layer == 0)
        def _():
            state_ref[...] = x_ref[...]

        xf = state_ref[...]                       # (B*S, D)
        aw = aw_ref[0]                            # (4, D, D)
        ab = ab_ref[0]                            # (4, 1, D)
        lng = lng_ref[0]                          # (2, 1, D)
        lnb = lnb_ref[0]

        attn = _mha(xf, xf, aw, ab, batch=batch, sq=seq, sk=seq,
                    heads=heads, head_dim=head_dim)
        xf = _layernorm(xf + attn, lng[0], lnb[0])

        hdn = jnp.maximum(
            jnp.dot(xf, w1_ref[0], preferred_element_type=F32) + b1_ref[0], 0.0)
        ff = jnp.dot(hdn, w2_ref[0], preferred_element_type=F32) + b2_ref[0]
        xf = _layernorm(xf + ff, lng[1], lnb[1])

        state_ref[...] = xf

        @pl.when(layer == pl.num_programs(0) - 1)
        def _():
            o_ref[...] = xf

    return kernel


def make_decoder_stack_kernel(batch, seq_q, seq_kv, heads, head_dim):
    """Whole decoder stack + fused actor/critic heads (written at last layer)."""
    def kernel(x_ref, e_ref,
               saw_ref, sab_ref, caw_ref, cab_ref, lng_ref, lnb_ref,
               w1_ref, b1_ref, w2_ref, b2_ref,
               aw1_ref, ab1_ref, aw2_ref, ab2_ref,
               cw1_ref, cb1_ref, cw2_ref, cb2_ref,
               pol_ref, val_ref, state_ref):
        layer = pl.program_id(0)

        @pl.when(layer == 0)
        def _():
            state_ref[...] = x_ref[...]

        xf = state_ref[...]                       # (B*S, D)
        ef = e_ref[...]                           # (B*Se, D)
        lng = lng_ref[0]                          # (3, 1, D)
        lnb = lnb_ref[0]

        sa = _mha(xf, xf, saw_ref[0], sab_ref[0], batch=batch, sq=seq_q,
                  sk=seq_q, heads=heads, head_dim=head_dim)
        xf = _layernorm(xf + sa, lng[0], lnb[0])

        ca = _mha(xf, ef, caw_ref[0], cab_ref[0], batch=batch, sq=seq_q,
                  sk=seq_kv, heads=heads, head_dim=head_dim)
        xf = _layernorm(xf + ca, lng[1], lnb[1])

        hdn = jnp.maximum(
            jnp.dot(xf, w1_ref[0], preferred_element_type=F32) + b1_ref[0], 0.0)
        ff = jnp.dot(hdn, w2_ref[0], preferred_element_type=F32) + b2_ref[0]
        xf = _layernorm(xf + ff, lng[2], lnb[2])

        state_ref[...] = xf

        @pl.when(layer == pl.num_programs(0) - 1)
        def _():
            # actor head: Linear -> ReLU -> Linear (output cols padded to 128)
            ah = jnp.maximum(
                jnp.dot(xf, aw1_ref[...], preferred_element_type=F32)
                + ab1_ref[...], 0.0)
            pol_ref[...] = (jnp.dot(ah, aw2_ref[...], preferred_element_type=F32)
                            + ab2_ref[...])
            # critic head: Linear -> ReLU -> Linear (output cols padded to 128)
            ch = jnp.maximum(
                jnp.dot(xf, cw1_ref[...], preferred_element_type=F32)
                + cb1_ref[...], 0.0)
            val_ref[...] = (jnp.dot(ch, cw2_ref[...], preferred_element_type=F32)
                            + cb2_ref[...])

    return kernel


# ------------------------------------------------------------------- pallas_call glue

def _const_spec(shape):
    """Full-array block, same block for every grid step (DMA'd once)."""
    nd = len(shape)
    return pl.BlockSpec(shape, lambda l, nd=nd: (0,) * nd)


def _layer_spec(shape):
    """Leading dim is the stacked-layer axis; block index follows the grid."""
    nd = len(shape)
    return pl.BlockSpec((1,) + tuple(shape[1:]),
                        lambda l, nd=nd: (l,) + (0,) * (nd - 1))


def build_encoder_fn(params, *, batch, seq, d_model, heads, layers):
    n = batch * seq
    kernel = make_encoder_stack_kernel(batch, seq, heads, d_model // heads)
    in_specs = [
        _const_spec((n, d_model)),
        _layer_spec(params['aw'].shape),
        _layer_spec(params['ab'].shape),
        _layer_spec(params['lng'].shape),
        _layer_spec(params['lnb'].shape),
        _layer_spec(params['w1'].shape),
        _layer_spec(params['b1'].shape),
        _layer_spec(params['w2'].shape),
        _layer_spec(params['b2'].shape),
    ]
    call = pl.pallas_call(
        kernel,
        out_shape=jax.ShapeDtypeStruct((n, d_model), F32),
        grid=(layers,),
        in_specs=in_specs,
        out_specs=_const_spec((n, d_model)),
        scratch_shapes=[pltpu.VMEM((n, d_model), F32)],
        compiler_params=pltpu.CompilerParams(
            dimension_semantics=("arbitrary",)),
    )

    def fn(x_flat):
        return call(x_flat, params['aw'], params['ab'], params['lng'],
                    params['lnb'], params['w1'], params['b1'],
                    params['w2'], params['b2'])

    return fn


def build_decoder_fn(dparams, hparams, *, batch, seq, enc_seq, d_model, heads,
                     layers):
    nq = batch * seq
    nk = batch * enc_seq
    kernel = make_decoder_stack_kernel(batch, seq, enc_seq, heads,
                                       d_model // heads)
    in_specs = [
        _const_spec((nq, d_model)),
        _const_spec((nk, d_model)),
        _layer_spec(dparams['saw'].shape),
        _layer_spec(dparams['sab'].shape),
        _layer_spec(dparams['caw'].shape),
        _layer_spec(dparams['cab'].shape),
        _layer_spec(dparams['lng'].shape),
        _layer_spec(dparams['lnb'].shape),
        _layer_spec(dparams['w1'].shape),
        _layer_spec(dparams['b1'].shape),
        _layer_spec(dparams['w2'].shape),
        _layer_spec(dparams['b2'].shape),
        _const_spec(hparams['aw1'].shape),
        _const_spec(hparams['ab1'].shape),
        _const_spec(hparams['aw2'].shape),
        _const_spec(hparams['ab2'].shape),
        _const_spec(hparams['cw1'].shape),
        _const_spec(hparams['cb1'].shape),
        _const_spec(hparams['cw2'].shape),
        _const_spec(hparams['cb2'].shape),
    ]
    call = pl.pallas_call(
        kernel,
        out_shape=(jax.ShapeDtypeStruct((nq, HEAD_PAD), F32),
                   jax.ShapeDtypeStruct((nq, HEAD_PAD), F32)),
        grid=(layers,),
        in_specs=in_specs,
        out_specs=(_const_spec((nq, HEAD_PAD)), _const_spec((nq, HEAD_PAD))),
        scratch_shapes=[pltpu.VMEM((nq, d_model), F32)],
        compiler_params=pltpu.CompilerParams(
            dimension_semantics=("arbitrary",)),
    )

    def fn(x_flat, enc_flat):
        return call(x_flat, enc_flat,
                    dparams['saw'], dparams['sab'], dparams['caw'],
                    dparams['cab'], dparams['lng'], dparams['lnb'],
                    dparams['w1'], dparams['b1'], dparams['w2'], dparams['b2'],
                    hparams['aw1'], hparams['ab1'], hparams['aw2'],
                    hparams['ab2'], hparams['cw1'], hparams['cb1'],
                    hparams['cw2'], hparams['cb2'])

    return fn


# --------------------------------------------------------------------------- parameters

def _init_params(key, d_model, mlp_dim, enc_layers, dec_layers, action_dim,
                 value_points, critic_dim):
    def rand(k, shape):
        return jax.random.normal(k, shape, F32) * 0.02

    keys = jax.random.split(key, 11)
    enc = dict(
        aw=rand(keys[0], (enc_layers, 4, d_model, d_model)),
        ab=jnp.zeros((enc_layers, 4, 1, d_model), F32),
        lng=jnp.ones((enc_layers, 2, 1, d_model), F32),
        lnb=jnp.zeros((enc_layers, 2, 1, d_model), F32),
        w1=rand(keys[1], (enc_layers, d_model, mlp_dim)),
        b1=jnp.zeros((enc_layers, 1, mlp_dim), F32),
        w2=rand(keys[2], (enc_layers, mlp_dim, d_model)),
        b2=jnp.zeros((enc_layers, 1, d_model), F32),
    )
    dec = dict(
        saw=rand(keys[3], (dec_layers, 4, d_model, d_model)),
        sab=jnp.zeros((dec_layers, 4, 1, d_model), F32),
        caw=rand(keys[4], (dec_layers, 4, d_model, d_model)),
        cab=jnp.zeros((dec_layers, 4, 1, d_model), F32),
        lng=jnp.ones((dec_layers, 3, 1, d_model), F32),
        lnb=jnp.zeros((dec_layers, 3, 1, d_model), F32),
        w1=rand(keys[5], (dec_layers, d_model, mlp_dim)),
        b1=jnp.zeros((dec_layers, 1, mlp_dim), F32),
        w2=rand(keys[6], (dec_layers, mlp_dim, d_model)),
        b2=jnp.zeros((dec_layers, 1, d_model), F32),
    )
    # Head output weights are zero-padded to 128 lanes for lane-dense stores;
    # the wrapper slices the real columns afterwards (identical numerics).
    aw2 = jnp.zeros((d_model, HEAD_PAD), F32).at[:, :action_dim].set(
        rand(keys[8], (d_model, action_dim)))
    cw2 = jnp.zeros((critic_dim, HEAD_PAD), F32).at[:, :value_points].set(
        rand(keys[10], (critic_dim, value_points)))
    heads = dict(
        aw1=rand(keys[7], (d_model, d_model)),
        ab1=jnp.zeros((1, d_model), F32),
        aw2=aw2,
        ab2=jnp.zeros((1, HEAD_PAD), F32),
        cw1=rand(keys[9], (d_model, critic_dim)),
        cb1=jnp.zeros((1, critic_dim), F32),
        cw2=cw2,
        cb2=jnp.zeros((1, HEAD_PAD), F32),
    )
    return enc, dec, heads


# ------------------------------------------------------------------------------- model

class ModTransformerPallas:
    def __init__(self, model_dim, mlp_dim, attn_heads, sequence_length,
                 enc_layers, memory_layers, mem_length, dec_layers, action_dim,
                 key, value_points=5):
        # TODO(synk): memory_layers / mem_length semantics are undefined in the
        # reference snippet (decoder class body not provided); unused here.
        del memory_layers, mem_length, sequence_length
        self.model_dim = model_dim
        self.mlp_dim = mlp_dim
        self.heads = attn_heads
        self.n_enc_layers = enc_layers
        self.n_dec_layers = dec_layers
        self.action_dim = action_dim
        self.value_points = value_points

        self.enc_params, self.dec_params, self.head_params = _init_params(
            key, model_dim, mlp_dim, enc_layers, dec_layers, action_dim,
            value_points, 2 * model_dim)

        self._enc_fns = {}
        self._dec_fns = {}

        # stateful hand cache, mirroring the PyTorch module (host-side glue).
        self.hands = {}
        self.seen = {0: False, 1: False}

    # ---- lazily-built pallas callables, cached per input shape ----
    def _encoder_fn(self, batch, seq):
        k = (batch, seq)
        if k not in self._enc_fns:
            self._enc_fns[k] = build_encoder_fn(
                self.enc_params, batch=batch, seq=seq, d_model=self.model_dim,
                heads=self.heads, layers=self.n_enc_layers)
        return self._enc_fns[k]

    def _decoder_fn(self, batch, seq, enc_seq):
        k = (batch, seq, enc_seq)
        if k not in self._dec_fns:
            self._dec_fns[k] = build_decoder_fn(
                self.dec_params, self.head_params, batch=batch, seq=seq,
                enc_seq=enc_seq, d_model=self.model_dim, heads=self.heads,
                layers=self.n_dec_layers)
        return self._dec_fns[k]

    # ---- forward (mirrors mod_transformer.forward) ----
    def __call__(self, enc_input, dec_input, player, new_hand):
        if new_hand:
            self.seen = {0: False, 1: False}
        if self.seen[player]:
            enc_flat, eb, es = self.hands[player]
        else:
            self.seen[player] = True
            eb, es, _ = enc_input.shape
            enc_flat = self._encoder_fn(eb, es)(
                enc_input.reshape(eb * es, self.model_dim))
            self.hands[player] = (enc_flat, eb, es)

        b, s, _ = dec_input.shape
        pol_pad, val_pad = self._decoder_fn(b, s, es)(
            dec_input.reshape(b * s, self.model_dim), enc_flat)

        policy_logits = pol_pad[:, :self.action_dim].reshape(b, s, self.action_dim)
        value = val_pad[:, :self.value_points].reshape(b, s, self.value_points)
        return policy_logits, value


# -------------------------------------------------------------------------------- main

if __name__ == "__main__":
    B, D, MLP, H, S = 2, 32, 64, 2, 8
    ACTION_DIM = 10

    model = ModTransformerPallas(
        model_dim=D, mlp_dim=MLP, attn_heads=H, sequence_length=S,
        enc_layers=2, memory_layers=1, mem_length=4, dec_layers=2,
        action_dim=ACTION_DIM, key=jax.random.PRNGKey(0))

    k1, k2 = jax.random.split(jax.random.PRNGKey(0))
    enc_input = jax.random.normal(k1, (B, S, D), jnp.float32)
    dec_input = jax.random.normal(k2, (B, S, D), jnp.float32)

    # fresh hand: encoder + decoder run
    policy_logits, value = model(enc_input, dec_input, player=0, new_hand=True)
    jax.block_until_ready((policy_logits, value))
    # same hand again: exercises the cached-encoder path (decoder only)
    policy_logits2, value2 = model(enc_input, dec_input, player=0, new_hand=False)
    jax.block_until_ready((policy_logits2, value2))

    assert policy_logits.shape == (B, S, ACTION_DIM)
    assert value.shape == (B, S, 5)
    assert policy_logits2.shape == (B, S, ACTION_DIM)
    assert value2.shape == (B, S, 5)
    print("KERNEL_OK")
</pallas_src>

<mosaic_0001>
module attributes {stable_mosaic.version = 11 : i64} {
  func.func @kernel(%arg0: i32, %arg1: memref<16x32xf32, #tpu.memory_space<vmem>>, %arg2: memref<1x4x32x32xf32, #tpu.memory_space<vmem>>, %arg3: memref<1x4x1x32xf32, #tpu.memory_space<vmem>>, %arg4: memref<1x2x1x32xf32, #tpu.memory_space<vmem>>, %arg5: memref<1x2x1x32xf32, #tpu.memory_space<vmem>>, %arg6: memref<1x32x64xf32, #tpu.memory_space<vmem>>, %arg7: memref<1x1x64xf32, #tpu.memory_space<vmem>>, %arg8: memref<1x64x32xf32, #tpu.memory_space<vmem>>, %arg9: memref<1x1x32xf32, #tpu.memory_space<vmem>>, %arg10: memref<16x32xf32, #tpu.memory_space<vmem>>, %arg11: memref<16x32xf32, #tpu.memory_space<vmem>>) attributes {dimension_semantics = [#tpu.dimension_semantics<arbitrary>], iteration_bounds = array<i64: 2>, scalar_prefetch = 0 : i64, scratch_operands = 1 : i64, tpu.core_type = #tpu.core_type<tc>, window_params = [{pipeline_mode = #tpu.pipeline_mode<synchronous>, transform_indices = @transform_0, window_bounds = array<i64: 16, 32>}, {transform_indices = @transform_1, window_bounds = array<i64: 1, 4, 32, 32>}, {transform_indices = @transform_2, window_bounds = array<i64: 1, 4, 1, 32>}, {transform_indices = @transform_3, window_bounds = array<i64: 1, 2, 1, 32>}, {transform_indices = @transform_4, window_bounds = array<i64: 1, 2, 1, 32>}, {transform_indices = @transform_5, window_bounds = array<i64: 1, 32, 64>}, {transform_indices = @transform_6, window_bounds = array<i64: 1, 1, 64>}, {transform_indices = @transform_7, window_bounds = array<i64: 1, 64, 32>}, {transform_indices = @transform_8, window_bounds = array<i64: 1, 1, 32>}, {pipeline_mode = #tpu.pipeline_mode<synchronous>, transform_indices = @transform_9, window_bounds = array<i64: 16, 32>}]} {
    %c0_i32 = arith.constant 0 : i32
    %0 = arith.cmpi eq, %arg0, %c0_i32 : i32
    %1 = arith.extui %0 : i1 to i32
    %c0_i32_0 = arith.constant 0 : i32
    %2 = arith.cmpi ne, %1, %c0_i32_0 : i32
    scf.if %2 {
      %c0_60 = arith.constant 0 : index
      %c0_61 = arith.constant 0 : index
      %162 = vector.load %arg1[%c0_60, %c0_61] : memref<16x32xf32, #tpu.memory_space<vmem>>, vector<16x32xf32>
      %c0_62 = arith.constant 0 : index
      %c0_63 = arith.constant 0 : index
      %163 = vector.load %arg11[%c0_62, %c0_63] : memref<16x32xf32, #tpu.memory_space<vmem>>, vector<16x32xf32>
      tpu.vector_store %arg11[%c0_62, %c0_63], %162 {strides = array<i32>} : memref<16x32xf32, #tpu.memory_space<vmem>>, vector<16x32xf32>,
    } else {
    }
    %c0 = arith.constant 0 : index
    %c0_1 = arith.constant 0 : index
    %3 = vector.load %arg11[%c0, %c0_1] : memref<16x32xf32, #tpu.memory_space<vmem>>, vector<16x32xf32>
    %c0_2 = arith.constant 0 : index
    %c0_3 = arith.constant 0 : index
    %c0_4 = arith.constant 0 : index
    %c0_5 = arith.constant 0 : index
    %4 = vector.load %arg2[%c0_2, %c0_3, %c0_4, %c0_5] : memref<1x4x32x32xf32, #tpu.memory_space<vmem>>, vector<1x4x32x32xf32>
    %5 = vector.shape_cast %4 : vector<1x4x32x32xf32> to vector<4x32x32xf32>
    %c0_6 = arith.constant 0 : index
    %c0_7 = arith.constant 0 : index
    %c0_8 = arith.constant 0 : index
    %c0_9 = arith.constant 0 : index
    %6 = vector.load %arg3[%c0_6, %c0_7, %c0_8, %c0_9] : memref<1x4x1x32xf32, #tpu.memory_space<vmem>>, vector<1x4x1x32xf32>
    %7 = vector.shape_cast %6 : vector<1x4x1x32xf32> to vector<4x1x32xf32>
    %c0_10 = arith.constant 0 : index
    %c0_11 = arith.constant 0 : index
    %c0_12 = arith.constant 0 : index
    %c0_13 = arith.constant 0 : index
    %8 = vector.load %arg4[%c0_10, %c0_11, %c0_12, %c0_13] : memref<1x2x1x32xf32, #tpu.memory_space<vmem>>, vector<1x2x1x32xf32>
    %9 = vector.shape_cast %8 : vector<1x2x1x32xf32> to vector<2x1x32xf32>
    %c0_14 = arith.constant 0 : index
    %c0_15 = arith.constant 0 : index
    %c0_16 = arith.constant 0 : index
    %c0_17 = arith.constant 0 : index
    %10 = vector.load %arg5[%c0_14, %c0_15, %c0_16, %c0_17] : memref<1x2x1x32xf32, #tpu.memory_space<vmem>>, vector<1x2x1x32xf32>
    %11 = vector.shape_cast %10 : vector<1x2x1x32xf32> to vector<2x1x32xf32>
    %12 = vector.extract_strided_slice %5 {offsets = [0, 0, 0], sizes = [1, 32, 32], strides = [1, 1, 1]} : vector<4x32x32xf32> to vector<1x32x32xf32>
    %13 = vector.shape_cast %12 : vector<1x32x32xf32> to vector<32x32xf32>
    %cst = arith.constant dense<0.000000e+00> : vector<16x32xf32>
    %14 = tpu.matmul %3, %13, %cst {dimension_numbers = #tpu.dot_dimension_numbers<[1], [0], [0], [1], [0, 0, 1, 1], [], []>} : vector<16x32xf32>, vector<32x32xf32>, vector<16x32xf32> -> vector<16x32xf32>
    %15 = vector.extract_strided_slice %7 {offsets = [0, 0, 0], sizes = [1, 1, 32], strides = [1, 1, 1]} : vector<4x1x32xf32> to vector<1x1x32xf32>
    %16 = vector.shape_cast %15 : vector<1x1x32xf32> to vector<1x32xf32>
    %17 = vector.broadcast %16 : vector<1x32xf32> to vector<16x32xf32>
    %18 = arith.addf %14, %17 : vector<16x32xf32>
    %19 = vector.extract_strided_slice %5 {offsets = [1, 0, 0], sizes = [1, 32, 32], strides = [1, 1, 1]} : vector<4x32x32xf32> to vector<1x32x32xf32>
    %20 = vector.shape_cast %19 : vector<1x32x32xf32> to vector<32x32xf32>
    %cst_18 = arith.constant dense<0.000000e+00> : vector<16x32xf32>
    %21 = tpu.matmul %3, %20, %cst_18 {dimension_numbers = #tpu.dot_dimension_numbers<[1], [0], [0], [1], [0, 0, 1, 1], [], []>} : vector<16x32xf32>, vector<32x32xf32>, vector<16x32xf32> -> vector<16x32xf32>
    %22 = vector.extract_strided_slice %7 {offsets = [1, 0, 0], sizes = [1, 1, 32], strides = [1, 1, 1]} : vector<4x1x32xf32> to vector<1x1x32xf32>
    %23 = vector.shape_cast %22 : vector<1x1x32xf32> to vector<1x32xf32>
    %24 = vector.broadcast %23 : vector<1x32xf32> to vector<16x32xf32>
    %25 = arith.addf %21, %24 : vector<16x32xf32>
    %26 = vector.extract_strided_slice %5 {offsets = [2, 0, 0], sizes = [1, 32, 32], strides = [1, 1, 1]} : vector<4x32x32xf32> to vector<1x32x32xf32>
    %27 = vector.shape_cast %26 : vector<1x32x32xf32> to vector<32x32xf32>
    %cst_19 = arith.constant dense<0.000000e+00> : vector<16x32xf32>
    %28 = tpu.matmul %3, %27, %cst_19 {dimension_numbers = #tpu.dot_dimension_numbers<[1], [0], [0], [1], [0, 0, 1, 1], [], []>} : vector<16x32xf32>, vector<32x32xf32>, vector<16x32xf32> -> vector<16x32xf32>
    %29 = vector.extract_strided_slice %7 {offsets = [2, 0, 0], sizes = [1, 1, 32], strides = [1, 1, 1]} : vector<4x1x32xf32> to vector<1x1x32xf32>
    %30 = vector.shape_cast %29 : vector<1x1x32xf32> to vector<1x32xf32>
    %31 = vector.broadcast %30 : vector<1x32xf32> to vector<16x32xf32>
    %32 = arith.addf %28, %31 : vector<16x32xf32>
    %33 = vector.extract_strided_slice %18 {offsets = [0, 0], sizes = [16, 16], strides = [1, 1]} : vector<16x32xf32> to vector<16x16xf32>
    %34 = vector.shape_cast %33 : vector<16x16xf32> to vector<2x8x16xf32>
    %35 = vector.extract_strided_slice %25 {offsets = [0, 0], sizes = [16, 16], strides = [1, 1]} : vector<16x32xf32> to vector<16x16xf32>
    %36 = vector.shape_cast %35 : vector<16x16xf32> to vector<2x8x16xf32>
    %37 = vector.extract_strided_slice %32 {offsets = [0, 0], sizes = [16, 16], strides = [1, 1]} : vector<16x32xf32> to vector<16x16xf32>
    %38 = vector.shape_cast %37 : vector<16x16xf32> to vector<2x8x16xf32>
    "tpu.trace_start"() <{level = 10 : i32, message = "bqd,bkd->bqk"}> : () -> ()
    %cst_20 = arith.constant dense<0.000000e+00> : vector<2x8x8xf32>
    %39 = tpu.matmul %34, %36, %cst_20 {dimension_numbers = #tpu.dot_dimension_numbers<[2], [2], [1], [1], [0, 0, 0, 1, 1, 1], [0], [0]>} : vector<2x8x16xf32>, vector<2x8x16xf32>, vector<2x8x8xf32> -> vector<2x8x8xf32>
    "tpu.trace_stop"() : () -> ()
    %cst_21 = arith.constant 2.500000e-01 : f32
    %40 = vector.broadcast %cst_21 : f32 to vector<2x8x8xf32>
    %41 = arith.mulf %39, %40 : vector<2x8x8xf32>
    %cst_22 = arith.constant dense<0xFF800000> : vector<2x8xf32>
    %42 = vector.multi_reduction <maximumf>, %41, %cst_22 [2] : vector<2x8x8xf32> to vector<2x8xf32>
    %43 = vector.shape_cast %42 : vector<2x8xf32> to vector<2x8x1xf32>
    %44 = vector.broadcast %43 : vector<2x8x1xf32> to vector<2x8x8xf32>
    %45 = arith.subf %41, %44 : vector<2x8x8xf32>
    %46 = math.exp %45 : vector<2x8x8xf32>
    %cst_23 = arith.constant dense<0.000000e+00> : vector<2x8xf32>
    %47 = vector.multi_reduction <add>, %46, %cst_23 [2] : vector<2x8x8xf32> to vector<2x8xf32>
    %48 = vector.shape_cast %47 : vector<2x8xf32> to vector<2x8x1xf32>
    %49 = tpu.reciprocal %48 {approx = true} : vector<2x8x1xf32> -> vector<2x8x1xf32>
    %50 = vector.broadcast %49 : vector<2x8x1xf32> to vector<2x8x8xf32>
    %51 = arith.mulf %46, %50 : vector<2x8x8xf32>
    "tpu.trace_start"() <{level = 10 : i32, message = "bqk,bkd->bqd"}> : () -> ()
    %cst_24 = arith.constant dense<0.000000e+00> : vector<2x8x16xf32>
    %52 = tpu.matmul %51, %38, %cst_24 {dimension_numbers = #tpu.dot_dimension_numbers<[2], [1], [1], [2], [0, 0, 0, 1, 1, 2], [0], [0]>} : vector<2x8x8xf32>, vector<2x8x16xf32>, vector<2x8x16xf32> -> vector<2x8x16xf32>
    "tpu.trace_stop"() : () -> ()
    %53 = vector.shape_cast %52 : vector<2x8x16xf32> to vector<16x16xf32>
    %54 = vector.extract_strided_slice %5 {offsets = [3, 0, 0], sizes = [1, 32, 32], strides = [1, 1, 1]} : vector<4x32x32xf32> to vector<1x32x32xf32>
    %55 = vector.shape_cast %54 : vector<1x32x32xf32> to vector<32x32xf32>
    %56 = vector.extract_strided_slice %55 {offsets = [0, 0], sizes = [16, 32], strides = [1, 1]} : vector<32x32xf32> to vector<16x32xf32>
    %cst_25 = arith.constant dense<0.000000e+00> : vector<16x32xf32>
    %57 = tpu.matmul %53, %56, %cst_25 {dimension_numbers = #tpu.dot_dimension_numbers<[1], [0], [0], [1], [0, 0, 1, 1], [], []>} : vector<16x16xf32>, vector<16x32xf32>, vector<16x32xf32> -> vector<16x32xf32>
    %58 = vector.extract_strided_slice %18 {offsets = [0, 16], sizes = [16, 16], strides = [1, 1]} : vector<16x32xf32> to vector<16x16xf32>
    %59 = vector.shape_cast %58 : vector<16x16xf32> to vector<2x8x16xf32>
    %60 = vector.extract_strided_slice %25 {offsets = [0, 16], sizes = [16, 16], strides = [1, 1]} : vector<16x32xf32> to vector<16x16xf32>
    %61 = vector.shape_cast %60 : vector<16x16xf32> to vector<2x8x16xf32>
    %62 = vector.extract_strided_slice %32 {offsets = [0, 16], sizes = [16, 16], strides = [1, 1]} : vector<16x32xf32> to vector<16x16xf32>
    %63 = vector.shape_cast %62 : vector<16x16xf32> to vector<2x8x16xf32>
    "tpu.trace_start"() <{level = 10 : i32, message = "bqd,bkd->bqk"}> : () -> ()
    %cst_26 = arith.constant dense<0.000000e+00> : vector<2x8x8xf32>
    %64 = tpu.matmul %59, %61, %cst_26 {dimension_numbers = #tpu.dot_dimension_numbers<[2], [2], [1], [1], [0, 0, 0, 1, 1, 1], [0], [0]>} : vector<2x8x16xf32>, vector<2x8x16xf32>, vector<2x8x8xf32> -> vector<2x8x8xf32>
    "tpu.trace_stop"() : () -> ()
    %cst_27 = arith.constant 2.500000e-01 : f32
    %65 = vector.broadcast %cst_27 : f32 to vector<2x8x8xf32>
    %66 = arith.mulf %64, %65 : vector<2x8x8xf32>
    %cst_28 = arith.constant dense<0xFF800000> : vector<2x8xf32>
    %67 = vector.multi_reduction <maximumf>, %66, %cst_28 [2] : vector<2x8x8xf32> to vector<2x8xf32>
    %68 = vector.shape_cast %67 : vector<2x8xf32> to vector<2x8x1xf32>
    %69 = vector.broadcast %68 : vector<2x8x1xf32> to vector<2x8x8xf32>
    %70 = arith.subf %66, %69 : vector<2x8x8xf32>
    %71 = math.exp %70 : vector<2x8x8xf32>
    %cst_29 = arith.constant dense<0.000000e+00> : vector<2x8xf32>
    %72 = vector.multi_reduction <add>, %71, %cst_29 [2] : vector<2x8x8xf32> to vector<2x8xf32>
    %73 = vector.shape_cast %72 : vector<2x8xf32> to vector<2x8x1xf32>
    %74 = tpu.reciprocal %73 {approx = true} : vector<2x8x1xf32> -> vector<2x8x1xf32>
    %75 = vector.broadcast %74 : vector<2x8x1xf32> to vector<2x8x8xf32>
    %76 = arith.mulf %71, %75 : vector<2x8x8xf32>
    "tpu.trace_start"() <{level = 10 : i32, message = "bqk,bkd->bqd"}> : () -> ()
    %cst_30 = arith.constant dense<0.000000e+00> : vector<2x8x16xf32>
    %77 = tpu.matmul %76, %63, %cst_30 {dimension_numbers = #tpu.dot_dimension_numbers<[2], [1], [1], [2], [0, 0, 0, 1, 1, 2], [0], [0]>} : vector<2x8x8xf32>, vector<2x8x16xf32>, vector<2x8x16xf32> -> vector<2x8x16xf32>
    "tpu.trace_stop"() : () -> ()
    %78 = vector.shape_cast %77 : vector<2x8x16xf32> to vector<16x16xf32>
    %79 = vector.extract_strided_slice %5 {offsets = [3, 0, 0], sizes = [1, 32, 32], strides = [1, 1, 1]} : vector<4x32x32xf32> to vector<1x32x32xf32>
    %80 = vector.shape_cast %79 : vector<1x32x32xf32> to vector<32x32xf32>
    %81 = vector.extract_strided_slice %80 {offsets = [16, 0], sizes = [16, 32], strides = [1, 1]} : vector<32x32xf32> to vector<16x32xf32>
    %cst_31 = arith.constant dense<0.000000e+00> : vector<16x32xf32>
    %82 = tpu.matmul %78, %81, %cst_31 {dimension_numbers = #tpu.dot_dimension_numbers<[1], [0], [0], [1], [0, 0, 1, 1], [], []>} : vector<16x16xf32>, vector<16x32xf32>, vector<16x32xf32> -> vector<16x32xf32>
    %83 = arith.addf %57, %82 : vector<16x32xf32>
    %84 = vector.extract_strided_slice %7 {offsets = [3, 0, 0], sizes = [1, 1, 32], strides = [1, 1, 1]} : vector<4x1x32xf32> to vector<1x1x32xf32>
    %85 = vector.shape_cast %84 : vector<1x1x32xf32> to vector<1x32xf32>
    %86 = vector.broadcast %85 : vector<1x32xf32> to vector<16x32xf32>
    %87 = arith.addf %83, %86 : vector<16x32xf32>
    %88 = arith.addf %3, %87 : vector<16x32xf32>
    %89 = vector.extract_strided_slice %9 {offsets = [0, 0, 0], sizes = [1, 1, 32], strides = [1, 1, 1]} : vector<2x1x32xf32> to vector<1x1x32xf32>
    %90 = vector.shape_cast %89 : vector<1x1x32xf32> to vector<1x32xf32>
    %91 = vector.extract_strided_slice %11 {offsets = [0, 0, 0], sizes = [1, 1, 32], strides = [1, 1, 1]} : vector<2x1x32xf32> to vector<1x1x32xf32>
    %92 = vector.shape_cast %91 : vector<1x1x32xf32> to vector<1x32xf32>
    %cst_32 = arith.constant dense<0.000000e+00> : vector<16xf32>
    %93 = vector.multi_reduction <add>, %88, %cst_32 [1] : vector<16x32xf32> to vector<16xf32>
    %94 = vector.shape_cast %93 : vector<16xf32> to vector<16x1xf32>
    %cst_33 = arith.constant 3.200000e+01 : f32
    %95 = vector.broadcast %cst_33 : f32 to vector<16x1xf32>
    %96 = arith.divf %94, %95 : vector<16x1xf32>
    %97 = vector.broadcast %96 : vector<16x1xf32> to vector<16x32xf32>
    %98 = arith.subf %88, %97 : vector<16x32xf32>
    %99 = arith.mulf %98, %98 : vector<16x32xf32>
    %cst_34 = arith.constant dense<0.000000e+00> : vector<16xf32>
    %100 = vector.multi_reduction <add>, %99, %cst_34 [1] : vector<16x32xf32> to vector<16xf32>
    %101 = vector.shape_cast %100 : vector<16xf32> to vector<16x1xf32>
    %cst_35 = arith.constant 3.200000e+01 : f32
    %102 = vector.broadcast %cst_35 : f32 to vector<16x1xf32>
    %103 = arith.divf %101, %102 : vector<16x1xf32>
    %104 = vector.broadcast %96 : vector<16x1xf32> to vector<16x32xf32>
    %105 = arith.subf %88, %104 : vector<16x32xf32>
    %cst_36 = arith.constant 9.99999974E-6 : f32
    %106 = vector.broadcast %cst_36 : f32 to vector<16x1xf32>
    %107 = arith.addf %103, %106 : vector<16x1xf32>
    %108 = math.rsqrt %107 : vector<16x1xf32>
    %109 = vector.broadcast %108 : vector<16x1xf32> to vector<16x32xf32>
    %110 = arith.mulf %105, %109 : vector<16x32xf32>
    %111 = vector.broadcast %90 : vector<1x32xf32> to vector<16x32xf32>
    %112 = arith.mulf %110, %111 : vector<16x32xf32>
    %113 = vector.broadcast %92 : vector<1x32xf32> to vector<16x32xf32>
    %114 = arith.addf %112, %113 : vector<16x32xf32>
    %c0_37 = arith.constant 0 : index
    %c0_38 = arith.constant 0 : index
    %c0_39 = arith.constant 0 : index
    %115 = vector.load %arg6[%c0_37, %c0_38, %c0_39] : memref<1x32x64xf32, #tpu.memory_space<vmem>>, vector<1x32x64xf32>
    %116 = vector.shape_cast %115 : vector<1x32x64xf32> to vector<32x64xf32>
    %cst_40 = arith.constant dense<0.000000e+00> : vector<16x64xf32>
    %117 = tpu.matmul %114, %116, %cst_40 {dimension_numbers = #tpu.dot_dimension_numbers<[1], [0], [0], [1], [0, 0, 1, 1], [], []>} : vector<16x32xf32>, vector<32x64xf32>, vector<16x64xf32> -> vector<16x64xf32>
    %c0_41 = arith.constant 0 : index
    %c0_42 = arith.constant 0 : index
    %c0_43 = arith.constant 0 : index
    %118 = vector.load %arg7[%c0_41, %c0_42, %c0_43] : memref<1x1x64xf32, #tpu.memory_space<vmem>>, vector<1x1x64xf32>
    %119 = vector.shape_cast %118 : vector<1x1x64xf32> to vector<1x64xf32>
    %120 = vector.broadcast %119 : vector<1x64xf32> to vector<16x64xf32>
    %121 = arith.addf %117, %120 : vector<16x64xf32>
    %cst_44 = arith.constant 0.000000e+00 : f32
    %122 = vector.broadcast %cst_44 : f32 to vector<16x64xf32>
    %123 = arith.maximumf %121, %122 : vector<16x64xf32>
    %c0_45 = arith.constant 0 : index
    %c0_46 = arith.constant 0 : index
    %c0_47 = arith.constant 0 : index
    %124 = vector.load %arg8[%c0_45, %c0_46, %c0_47] : memref<1x64x32xf32, #tpu.memory_space<vmem>>, vector<1x64x32xf32>
    %125 = vector.shape_cast %124 : vector<1x64x32xf32> to vector<64x32xf32>
    %cst_48 = arith.constant dense<0.000000e+00> : vector<16x32xf32>
    %126 = tpu.matmul %123, %125, %cst_48 {dimension_numbers = #tpu.dot_dimension_numbers<[1], [0], [0], [1], [0, 0, 1, 1], [], []>} : vector<16x64xf32>, vector<64x32xf32>, vector<16x32xf32> -> vector<16x32xf32>
    %c0_49 = arith.constant 0 : index
    %c0_50 = arith.constant 0 : index
    %c0_51 = arith.constant 0 : index
    %127 = vector.load %arg9[%c0_49, %c0_50, %c0_51] : memref<1x1x32xf32, #tpu.memory_space<vmem>>, vector<1x1x32xf32>
    %128 = vector.shape_cast %127 : vector<1x1x32xf32> to vector<1x32xf32>
    %129 = vector.broadcast %128 : vector<1x32xf32> to vector<16x32xf32>
    %130 = arith.addf %126, %129 : vector<16x32xf32>
    %131 = arith.addf %114, %130 : vector<16x32xf32>
    %132 = vector.extract_strided_slice %9 {offsets = [1, 0, 0], sizes = [1, 1, 32], strides = [1, 1, 1]} : vector<2x1x32xf32> to vector<1x1x32xf32>
    %133 = vector.shape_cast %132 : vector<1x1x32xf32> to vector<1x32xf32>
    %134 = vector.extract_strided_slice %11 {offsets = [1, 0, 0], sizes = [1, 1, 32], strides = [1, 1, 1]} : vector<2x1x32xf32> to vector<1x1x32xf32>
    %135 = vector.shape_cast %134 : vector<1x1x32xf32> to vector<1x32xf32>
    %cst_52 = arith.constant dense<0.000000e+00> : vector<16xf32>
    %136 = vector.multi_reduction <add>, %131, %cst_52 [1] : vector<16x32xf32> to vector<16xf32>
    %137 = vector.shape_cast %136 : vector<16xf32> to vector<16x1xf32>
    %cst_53 = arith.constant 3.200000e+01 : f32
    %138 = vector.broadcast %cst_53 : f32 to vector<16x1xf32>
    %139 = arith.divf %137, %138 : vector<16x1xf32>
    %140 = vector.broadcast %139 : vector<16x1xf32> to vector<16x32xf32>
    %141 = arith.subf %131, %140 : vector<16x32xf32>
    %142 = arith.mulf %141, %141 : vector<16x32xf32>
    %cst_54 = arith.constant dense<0.000000e+00> : vector<16xf32>
    %143 = vector.multi_reduction <add>, %142, %cst_54 [1] : vector<16x32xf32> to vector<16xf32>
    %144 = vector.shape_cast %143 : vector<16xf32> to vector<16x1xf32>
    %cst_55 = arith.constant 3.200000e+01 : f32
    %145 = vector.broadcast %cst_55 : f32 to vector<16x1xf32>
    %146 = arith.divf %144, %145 : vector<16x1xf32>
    %147 = vector.broadcast %139 : vector<16x1xf32> to vector<16x32xf32>
    %148 = arith.subf %131, %147 : vector<16x32xf32>
    %cst_56 = arith.constant 9.99999974E-6 : f32
    %149 = vector.broadcast %cst_56 : f32 to vector<16x1xf32>
    %150 = arith.addf %146, %149 : vector<16x1xf32>
    %151 = math.rsqrt %150 : vector<16x1xf32>
    %152 = vector.broadcast %151 : vector<16x1xf32> to vector<16x32xf32>
    %153 = arith.mulf %148, %152 : vector<16x32xf32>
    %154 = vector.broadcast %133 : vector<1x32xf32> to vector<16x32xf32>
    %155 = arith.mulf %153, %154 : vector<16x32xf32>
    %156 = vector.broadcast %135 : vector<1x32xf32> to vector<16x32xf32>
    %157 = arith.addf %155, %156 : vector<16x32xf32>
    %c0_57 = arith.constant 0 : index
    %c0_58 = arith.constant 0 : index
    %158 = vector.load %arg11[%c0_57, %c0_58] : memref<16x32xf32, #tpu.memory_space<vmem>>, vector<16x32xf32>
    tpu.vector_store %arg11[%c0_57, %c0_58], %157 {strides = array<i32>} : memref<16x32xf32, #tpu.memory_space<vmem>>, vector<16x32xf32>,
    %c1_i32 = arith.constant 1 : i32
    %159 = arith.cmpi eq, %arg0, %c1_i32 : i32
    %160 = arith.extui %159 : i1 to i32
    %c0_i32_59 = arith.constant 0 : i32
    %161 = arith.cmpi ne, %160, %c0_i32_59 : i32
    scf.if %161 {
      %c0_60 = arith.constant 0 : index
      %c0_61 = arith.constant 0 : index
      %162 = vector.load %arg10[%c0_60, %c0_61] : memref<16x32xf32, #tpu.memory_space<vmem>>, vector<16x32xf32>
      tpu.vector_store %arg10[%c0_60, %c0_61], %157 {strides = array<i32>} : memref<16x32xf32, #tpu.memory_space<vmem>>, vector<16x32xf32>,
    } else {
    }
    return
  }
  func.func @transform_0(%arg0: i32) -> (i32, i32) {
    %c0_i32 = arith.constant 0 : i32
    %c0_i32_0 = arith.constant 0 : i32
    %c0_i32_1 = arith.constant 0 : i32
    return %c0_i32, %c0_i32_0 : i32, i32
  }
  func.func @transform_1(%arg0: i32) -> (i32, i32, i32, i32) {
    %c0_i32 = arith.constant 0 : i32
    %c0_i32_0 = arith.constant 0 : i32
    %c0_i32_1 = arith.constant 0 : i32
    %c0_i32_2 = arith.constant 0 : i32
    return %arg0, %c0_i32, %c0_i32_0, %c0_i32_1 : i32, i32, i32, i32
  }
  func.func @transform_2(%arg0: i32) -> (i32, i32, i32, i32) {
    %c0_i32 = arith.constant 0 : i32
    %c0_i32_0 = arith.constant 0 : i32
    %c0_i32_1 = arith.constant 0 : i32
    %c0_i32_2 = arith.constant 0 : i32
    return %arg0, %c0_i32, %c0_i32_0, %c0_i32_1 : i32, i32, i32, i32
  }
  func.func @transform_3(%arg0: i32) -> (i32, i32, i32, i32) {
    %c0_i32 = arith.constant 0 : i32
    %c0_i32_0 = arith.constant 0 : i32
    %c0_i32_1 = arith.constant 0 : i32
    %c0_i32_2 = arith.constant 0 : i32
    return %arg0, %c0_i32, %c0_i32_0, %c0_i32_1 : i32, i32, i32, i32
  }
  func.func @transform_4(%arg0: i32) -> (i32, i32, i32, i32) {
    %c0_i32 = arith.constant 0 : i32
    %c0_i32_0 = arith.constant 0 : i32
    %c0_i32_1 = arith.constant 0 : i32
    %c0_i32_2 = arith.constant 0 : i32
    return %arg0, %c0_i32, %c0_i32_0, %c0_i32_1 : i32, i32, i32, i32
  }
  func.func @transform_5(%arg0: i32) -> (i32, i32, i32) {
    %c0_i32 = arith.constant 0 : i32
    %c0_i32_0 = arith.constant 0 : i32
    %c0_i32_1 = arith.constant 0 : i32
    return %arg0, %c0_i32, %c0_i32_0 : i32, i32, i32
  }
  func.func @transform_6(%arg0: i32) -> (i32, i32, i32) {
    %c0_i32 = arith.constant 0 : i32
    %c0_i32_0 = arith.constant 0 : i32
    %c0_i32_1 = arith.constant 0 : i32
    return %arg0, %c0_i32, %c0_i32_0 : i32, i32, i32
  }
  func.func @transform_7(%arg0: i32) -> (i32, i32, i32) {
    %c0_i32 = arith.constant 0 : i32
    %c0_i32_0 = arith.constant 0 : i32
    %c0_i32_1 = arith.constant 0 : i32
    return %arg0, %c0_i32, %c0_i32_0 : i32, i32, i32
  }
  func.func @transform_8(%arg0: i32) -> (i32, i32, i32) {
    %c0_i32 = arith.constant 0 : i32
    %c0_i32_0 = arith.constant 0 : i32
    %c0_i32_1 = arith.constant 0 : i32
    return %arg0, %c0_i32, %c0_i32_0 : i32, i32, i32
  }
  func.func @transform_9(%arg0: i32) -> (i32, i32) {
    %c0_i32 = arith.constant 0 : i32
    %c0_i32_0 = arith.constant 0 : i32
    %c0_i32_1 = arith.constant 0 : i32
    return %c0_i32, %c0_i32_0 : i32, i32
  }
}

</mosaic_0001>

<bundles_post_ra>
// kernel: tpu_custom_call.1
= control target key start
LH: loop header
LB: loop body
LE: loop exit
PB: predicated region body
PF: predicated region fallthrough
CT: control target
= control target key end

     0   :  { %s2830_s0 = inlined_call_operand.vmem [shape: f32[16,32], index: 0, kind: input, shape index: {}]   ;;  %s2831_s1 = inlined_call_operand.hbm [shape: f32[2,4,32,32], index: 1, kind: input, shape index: {}]   ;;  %s2832_s2 = inlined_call_operand.vmem [shape: f32[2,4,1,32], index: 2, kind: input, shape index: {}]   ;;  %s2833_s3 = inlined_call_operand.vmem [shape: f32[2,2,1,32], index: 3, kind: input, shape index: {}]   ;;  %s2834_s4 = inlined_call_operand.vmem [shape: f32[2,2,1,32], index: 4, kind: input, shape index: {}]   ;;  %s2835_s5 = inlined_call_operand.vmem [shape: f32[2,32,64], index: 5, kind: input, shape index: {}]   ;;  %s2836_s6 = inlined_call_operand.vmem [shape: f32[2,1,64], index: 6, kind: input, shape index: {}]   ;;  %s2837_s7 = inlined_call_operand.vmem [shape: f32[2,64,32], index: 7, kind: input, shape index: {}]   ;;  %s2838_s8 = inlined_call_operand.vmem [shape: f32[2,1,32], index: 8, kind: input, shape index: {}]   ;;  %s2839_s9 = inlined_call_operand.hbm [shape: f32[16,32], index: 9, kind: output, shape index: {}]  }
   0x1   :  { %2841 = sst [smem:[#allocation11_spill]] %s2831_s1 }
   0x2   :  { %2842 = sst [smem:[#allocation12_spill]] %s2832_s2 }
   0x3   :  { %2843 = sst [smem:[#allocation13_spill]] %s2833_s3 }
   0x4   :  { %14 = vsyncpa [#allocation4], 0 }
   0x5   :  { %16 = vsyncpa [#allocation4 + $0x1], 0 }
   0x6   :  { %17 = vsyncpa [#allocation5], 0  ;;  %s2521_s30 = smov 0   ;;  %s2523_s10 = smov 0  }
   0x7   :  { %s2525_s11 = smov 0   ;;  %s2527_s12 = smov 0  }
   0x8 LB: > { %2844 = sst [smem:[#allocation9_spill]] %s2456_s11  ;;  %s2540_s13 = sadd.s32 4294967295, %s2460_s12   ;;  %s2460_s12 = sphi %s2527_s12, %s2856_s12   ;;  %s2456_s11 = sphi %s2525_s11, %s2853_s11   ;;  %s2452_s10 = sphi %s2523_s10, %s2855_s10   ;;  %s2448_s30 = sphi %s2521_s30, %s2854_s30  }
   0x9   : > { %s2543_s14 = sadd.s32 1, %s2460_s12   ;;  %s51_s16 = sadd.s32 1, %s2456_s11 }
   0xa   : > { %s48_s15 = ssub.s32 %s2460_s12, %s2543_s14  ;;  %p58_p1 = scmp.ne.s32.totalorder %s2456_s11, %s2452_s10 }
   0xb   : > { %p49_p0 = scmp.eq.s32.totalorder %s48_s15, 0  ;;  %p59_p2 = scmp.eq.s32.totalorder %s2460_s12, 0 }
   0xc   : > { %p64_p3 = scmp.ne.s32.totalorder %s2452_s10, %s2448_s30  ;;  %p65_p5 = scmp.eq.s32.totalorder %s2540_s13, 0 }
   0xd   : > { %s2553_s17 = scalar_select %p49_p0, %s2456_s11, %s51_s16  }
   0xe   : > { %p60_p4 = por %p59_p2, %p58_p1  ;;  %p2299_p6 = scmp.lt.s32.totalorder %s2460_s12, 2 }
   0xf   : > { %2845 = sst [smem:[#allocation10_spill]] %s2553_s17  ;;  %p2557_p7 = por %p65_p5, %p64_p3 }
  0x10   : > { %s294_s19 = sand.u32 1, %s2456_s11   ;;  %s2053_s21 = sshll.u32 %s2460_s12, 11 }
  0x11   : > { %s1999_s20 = sshll.u32 %s294_s19, 7  ;;  %s2847_s1 = sld [smem:[#allocation11_spill]] }
  0x12   : > { %s298_s25 = scalar_lea.vmem [#allocation3], %s1999_s20  ;;  %p2570_p8 = pnand %p2299_p6, %p60_p4 }
  0x13   : > { %s305_s26 = sshll.u32 %s298_s25, 4  ;;  %s2575_s28 = scalar_lea.sflag [#allocation4], %s294_s19  ;;  %s2568_s26 = int_to_ptr.vmem [resolvable:$true] %s305_s26 }
  0x14   : > { %p2368_p11 = pneg %p2570_p8 }
  0x17   : > { %s2566_s24 = scalar_lea.hbm %s2847_s1, %s2053_s21  ;;  %s2371_s16 = scalar_lea.hbm %s2847_s1, 4096 }
  0x18   : > { %s2366_s29 = scalar_lea.hbm %s2566_s24, 2048  ;;  %p2372_p0 = scmp.lt.u32.totalorder %s2566_s24, %s2847_s1 }
  0x19   : > { %p2367_p10 = scmp.ne.s32.totalorder %s2566_s24, %s2366_s29  ;;  %p2373_p1 = scmp.lt.u32.totalorder %s2371_s16, %s2366_s29 }
  0x1a   : > { %p2375_p3 = scmp.lt.u32.totalorder %s2366_s29, %s2566_s24 }
  0x1b   : > { %p2369_p12 = pnand %p2368_p11, %p2367_p10  ;;  %p2374_p2 = por %p2373_p1, %p2372_p0 }
  0x1d   : > { %p2370_p13 = pneg %p2369_p12  ;;  %p2376_p4 = por %p2375_p3, %p2374_p2 }
  0x1f   : > { %p2377_p5 = pnand %p2376_p4, %p2370_p13 }
  0x21   : > { %2380 = shalt.err (!%p2377_p5)
}
  0x22   : > { %s2381_s19 = scalar_lea.vmem %s2568_s26, 2048  ;;  %s2462_s22 = smov [#allocation3]  }
  0x23   : > { %p2382_p6 = scmp.ne.s32.totalorder %s2568_s26, %s2381_s19  ;;  %s2386_s23 = sshll.u32 %s2462_s22, 4  ;;  %s2387_s23 = int_to_ptr.vmem [resolvable:$false] %s2386_s23 }
  0x24   : > { %s2388_s25 = scalar_lea.vmem %s2387_s23, 4096  ;;  %p2389_p9 = scmp.lt.s32.totalorder %s2568_s26, %s2387_s23 }
  0x25   : > { %p2384_p10 = pnand %p2382_p6, %p2368_p11  ;;  %p2390_p0 = scmp.lt.s32.totalorder %s2388_s25, %s2381_s19 }
  0x27   : > { %p2385_p12 = pneg %p2384_p10  ;;  %p2391_p1 = por %p2390_p0, %p2389_p9 }
  0x29   : > { %p2392_p2 = pnand %p2391_p1, %p2385_p12 }
  0x2b   : > { %2395 = shalt.err (!%p2392_p2)
}
  0x2c   : > { %s2463_s29 = smov 128   ;;  %s2464_s30 = smov 8  }
  0x2d   : > { %2298 = dma.hbm_to_vmem [thread:$0]  (!%p2570_p8), %s2566_s24, 2048, %s2568_s26, %s2575_s28, %s2463_s29, %s2463_s29, %s2464_s30  }
  0x2e   : > { %p362_p11 = scmp.lt.s32.totalorder %s2460_s12, 3  ;;  %p2849_p13 = scmp.ge.s32.totalorder %s2460_s12, 1 }
  0x30   : > { %p363_p3 = pnand %p2849_p13, %p362_p11 }
  0x31   : > { %s368_s15 = sand.u32 (!%p363_p3), 1, %s2452_s10  }
  0x32   : > { %366 = sbr.rel (%p363_p3) target bundleno = 2895 (0xb4f), region = 56  ;;  %s2003_s16 = sshll.u32 (!%p363_p3), %s368_s15, 7 }
  0x33   : > { %s369_s20 = scalar_lea.sflag (!%p363_p3), [#allocation4], %s368_s15  ;;  %s2607_s21 = scalar_lea.vmem (!%p363_p3), [#allocation3], %s2003_s16 }
  0x39   : > { %2439 = dma.done.wait (%p2557_p7), %s369_s20, 2048  }
  0x3a   : > { %2441 = vsyncadd (%p2557_p7), %s369_s20, 4294965248  ;;  %p430_p9 = scmp.lt.s32.totalorder %s2540_s13, 1  ;;  %s2850_s2 = sld [smem:[#allocation12_spill]] }
  0x3b   : > { %s2851_s3 = sld [smem:[#allocation13_spill]]  ;;  %p2011_p7 = scmp.ne.s32.totalorder %s2540_s13, 0 }
  0x3c   : > { %s2615_s24 = scalar_select %p430_p9, %s2540_s13, 1 }
  0x3d   : > { %461 = sbr.rel (%p2011_p7) target bundleno = 68 (0x44), region = 64  ;;  %v462_v0 = vld [vmem:[%s2830_s0] sm:$0xff] (!%p2011_p7)  ;;  %vm464_vm0 = vcmask (!%p2011_p7), 261120   ;;  %v463_v1 = vld [vmem:[%s2830_s0 + $0x8] sm:$0xff] (!%p2011_p7) }
  0x3e   : > { %s2004_s12 = sshll.u32 %s2615_s24, 2  ;;  %s2005_s26 = sshll.u32 %s2615_s24, 1  ;;  %465 = vst.msk [vmem:[#allocation2] sm:$0xff] (!%p2011_p7), %vm464_vm0, %v462_v0  ;;  %466 = vst.msk [vmem:[#allocation2 + $0x8] sm:$0xff] (!%p2011_p7), %vm464_vm0, %v463_v1 }
  0x3f   : > { %s2632_s30 = scalar_lea.vmem %s2834_s4, %s2005_s26  ;;  %s2054_s15 = sshll.u32 %s2615_s24, 5 }
  0x40   : > { %s2622_s19 = scalar_lea.vmem %s2850_s2, %s2004_s12  ;;  %s2638_s1 = scalar_lea.vmem %s2835_s5, %s2054_s15 }
  0x41   : > { %s2627_s23 = scalar_lea.vmem %s2851_s3, %s2005_s26  ;;  %s449_s12 = scalar_lea.vmem %s2836_s6, %s2615_s24 }
  0x42   : > { %s2055_s28 = sshll.u32 %s2615_s24, 6  ;;  %s457_s22 = scalar_lea.vmem %s2838_s8, %s2615_s24 }
  0x43   : > { %s2652_s26 = scalar_lea.vmem %s2837_s7, %s2055_s28 }
  0x44 PF: > { %v469_v2 = vld [vmem:[%s2607_s21] sm:$0xff]  ;;  %v470_v3 = vld [vmem:[%s2607_s21 + $0x8] sm:$0xff]  ;;  %v471_v4 = vld [vmem:[%s2607_s21 + $0x10] sm:$0xff]  ;;  %vm499_vm1 = vcmask 261120   ;;  %v2465_v16 = vmov 0.0   ;;  %vm2466_vm2 = vmmov 0  }
  0x45   : > { %v2231_v5 = vpack.c.bf16 %v470_v3, %v469_v2  ;;  %v472_v6 = vld [vmem:[%s2607_s21 + $0x18] sm:$0xff]  ;;  %v2665_v7 = vld [vmem:[#allocation2] sm:$0xff]  ;;  %v473_v9 = vld [vmem:[%s2607_s21 + $0x20] sm:$0xff]  ;;  %vm743_vm3 = vcmask 130048   ;;  %s2467_s2 = smov 112   ;;  %vm898_vm4 = vcmask 64512  }
  0x46   : > { %v2235_v8 = vpack.c.bf16 %v472_v6, %v471_v4  ;;  %2122 = vmatprep.mubr.msk.f32.mxu1 %vm499_vm1, %v2665_v7  ;;  %v474_v10 = vld [vmem:[%s2607_s21 + $0x28] sm:$0xff]  ;;  %2144 = vmatprep.mubr.msk.f32.mxu0 %vm499_vm1, %v2665_v7  ;;  %v475_v12 = vld [vmem:[%s2607_s21 + $0x30] sm:$0xff]  ;;  %v476_v13 = vld [vmem:[%s2607_s21 + $0x38] sm:$0xff]  ;;  %vm1725_vm5 = vcmask 523264   ;;  %p2048_p8 = scmp.ne.s32.totalorder %s2540_s13, 1 }
  0x47   : > { %2232 = vmatprep.subr.bf16.mxu1 %v2231_v5  ;;  %v2239_v11 = vpack.c.bf16 %v474_v10, %v473_v9  ;;  %v2675_v14 = vld [vmem:[#allocation2 + $0x8] sm:$0xff]  ;;  %v2243_v15 = vpack.c.bf16 %v476_v13, %v475_v12  ;;  %v2015_v19 = vld [vmem:[%s2622_s19 + $0x1] ss:$0 sm:$0xff]  ;;  %v2012_v23 = vld [vmem:[%s2622_s19] ss:$0 sm:$0xff] }
  0x48   : > { %2234 = vmatpush3.bf16.msra.mxu1 %v2231_v5  ;;  %v477_v27 = vld [vmem:[%s2607_s21 + $0x40] sm:$0xff]  ;;  %v478_v28 = vld [vmem:[%s2607_s21 + $0x48] sm:$0xff]  ;;  %v479_v29 = vld [vmem:[%s2607_s21 + $0x50] sm:$0xff] }
  0x49   : > { %2236 = vmatprep.subr.bf16.mxu1 %v2235_v8  ;;  %v2247_v30 = vpack.c.bf16 %v478_v28, %v477_v27  ;;  %v480_v31 = vld [vmem:[%s2607_s21 + $0x58] sm:$0xff]  ;;  %v2018_v52 = vld [vmem:[%s2622_s19 + $0x2] ss:$0 sm:$0xff] }
  0x4a   : > { %v2251_v32 = vpack.c.bf16 %v480_v31, %v479_v29 }
  0x4b   : > { %2248 = vmatprep.subr.bf16.mxu0 %v2247_v30 }
  0x4c   : > { %2238 = vmatpush3.bf16.msra.mxu1 %v2235_v8  ;;  %2250 = vmatpush3.bf16.msra.mxu0 %v2247_v30 }
  0x4d   : > { %2240 = vmatprep.subr.bf16.mxu1 %v2239_v11  ;;  %2252 = vmatprep.subr.bf16.mxu0 %v2251_v32 }
  0x4f   : > { %2123 = vmatmul.mubr.msk.f32.vlgmr.msra.gmra.mrb[0].mxu1 %vm499_vm1, %v2675_v14 }
  0x50   : > { %2242 = vmatpush3.bf16.msra.mxu1 %v2239_v11  ;;  %2133 = vmatprep.mubr.msk.f32.mxu1 %vm499_vm1, %v2665_v7 }
  0x51   : > { %2244 = vmatprep.subr.bf16.mxu1 %v2243_v15  ;;  %2254 = vmatpush3.bf16.msra.mxu0 %v2251_v32 }
  0x52   : > { %2157 = vmatprep.subr.mxu0 %v2465_v16 }
  0x54   : > { %2246 = vmatpush3.bf16.msra.mxu1 %v2243_v15  ;;  %2145 = vmatmul.mubr.msk.f32.vlgmr.msra.gmra.mrb[0].mxu0 %vm499_vm1, %v2675_v14 }
  0x55   : > { %2147 = vmatprep.subr.mxu1 %v2465_v16  ;;  %2159 = vmatprep.mubr.msk.f32.mxu0 %vm2466_vm2, %v2465_v16 }
  0x57   : > { %2134 = vmatmul.mubr.msk.f32.vlgmr.msra.gmra.mrb[2].mxu1 %vm499_vm1, %v2675_v14 }
  0x58   : > { %2149 = vmatprep.mubr.msk.f32.mxu1 %vm2466_vm2, %v2465_v16 }
 0x122   : > { %v2124_v17 = vpop.f32.mrb[0].mxu1 }
 0x123   : > { %v572_v18 = vpop.f32.mrb[1].mxu1  ;;  %v578_v26 = vadd.f32 %v2124_v17, %v2012_v23 }
 0x124   : > { %v573_v25 = vadd.f32 %v2012_v23, %v572_v18 }
 0x127   : > { %v2146_v51 = vpop.f32.mrb[0].mxu0 }
 0x128   : > { %v734_v53 = vpop.f32.mrb[1].mxu0  ;;  %v740_v54 = vadd.f32 %v2146_v51, %v2018_v52 }
 0x129   : > { %v735_v55 = vadd.f32 %v2018_v52, %v734_v53 }
 0x12a   : > { %v2135_v20 = vpop.f32.mrb[2].mxu1 }
 0x12b   : > { %v659_v21 = vadd.f32 %v2135_v20, %v2015_v19  ;;  %v653_v22 = vpop.f32.mrb[3].mxu1  ;;  %2158 = vmatpush3.msra.mxu0 %v735_v55 }
 0x12c   : > { %v654_v24 = vadd.f32 %v2015_v19, %v653_v22  ;;  %2167 = vmatprep.subr.mxu0 %v2465_v16 }
 0x12d   : > { %1147 = vrot.lane.b32.xlu1 %v659_v21, %s2467_s2 }
 0x12e   : > { %2148 = vmatpush3.xpose.msk.msra.mxu1 %vm743_vm3, %v654_v24 }
 0x12f   : > { %2152 = vmatprep.subr.mxu1 %v2465_v16 }
 0x131   : > { %1067 = vrot.lane.b32.xlu1 %v573_v25, %s2467_s2  ;;  %2150 = vmatmul.mubr.msk.f32.vlgmr.msra.gmra.mrb[4].mxu1 %vm743_vm3, %v573_v25 }
 0x132   : > { %2153 = vmatpush3.xpose.msk.msra.mxu1 %vm743_vm3, %v659_v21  ;;  %2154 = vmatprep.mubr.msk.f32.mxu1 %vm2466_vm2, %v2465_v16 }
 0x133   : > { %2162 = vmatprep.subr.mxu1 %v2465_v16 }
 0x135   : > { %2155 = vmatmul.mubr.msk.f32.vlgmr.msra.gmra.mrb[6].mxu1 %vm743_vm3, %v578_v26 }
 0x136   : > { %2164 = vmatprep.mubr.msk.f32.mxu1 %vm2466_vm2, %v2465_v16  ;;  %2163 = vmatpush3.msra.mxu1 %v740_v54 }
 0x137   : > { %2172 = vmatprep.subr.mxu1 %v2465_v16 }
 0x19f   : > { %v1148_v56 = vpop.permute.xlu1 %1147 }
 0x1a3   : > { %v1068_v57 = vpop.permute.xlu1 %1067 }
 0x204   : > { %v816_v33 = vpop.f32.mrb[4].mxu1 }
 0x205   : > { %v896_v34 = vmul.f32 0.25, %v816_v33  ;;  %v2151_v35 = vpop.f32.mrb[5].mxu1 }
 0x206   : > { %v484_v35 = vld [vmem:[%s2607_s21 + $0x78] sm:$0xff] }
 0x207   : > { %v899_v36 = vsel %vm898_vm4, %v896_v34, -inf }
 0x208   : > { %900 = vmax.xlane.f32.xlu0 %v899_v36  ;;  %v892_v37 = vpop.f32.mrb[6].mxu1 }
 0x209   : > { %v897_v38 = vmul.f32 0.25, %v892_v37  ;;  %v2156_v39 = vpop.f32.mrb[7].mxu1  ;;  %v481_v37 = vld [vmem:[%s2607_s21 + $0x60] sm:$0xff] }
 0x20b   : > { %v902_v40 = vsel %vm898_vm4, %v897_v38, -inf }
 0x20c   : > { %903 = vmax.xlane.f32.xlu0 %v902_v40 }
 0x222   : > { %1069 = vrot.lane.b32.xlu0 %v654_v24, %s2467_s2 }
 0x295   : > { %v901_v41 = vpop.xlane.xlu0 %900 }
 0x296   : > { %v905_v42 = vsub.f32 %v896_v34, %v901_v41  ;;  %v483_v34 = vld [vmem:[%s2607_s21 + $0x70] sm:$0xff] }
 0x297   : > { %v2255_v36 = vpack.c.bf16 %v484_v35, %v483_v34 }
 0x298   : > { %v907_v43 = vmul.f32 1.442695, %v905_v42 }
 0x299   : > { %v904_v44 = vpop.xlane.xlu0 %903 }
 0x29a   : > { %2342 = vpow2.f32 %v907_v43  ;;  %v906_v45 = vsub.f32 %v897_v38, %v904_v44  ;;  %v482_v38 = vld [vmem:[%s2607_s21 + $0x68] sm:$0xff]  ;;  %v2037_v44 = vld [vmem:[%s2622_s19 + $0x3] ss:$0 sm:$0xff] }
 0x29b   : > { %v2259_v39 = vpack.c.bf16 %v482_v38, %v481_v37 }
 0x29c   : > { %v909_v46 = vmul.f32 1.442695, %v906_v45 }
 0x29d   : > { %v1070_v62 = vpop.permute.xlu0 %1069 }
 0x29e   : > { %2344 = vpow2.f32 %v909_v46 }
 0x2a4   : > { %v2343_v47 = vpop.eup %2342 }
 0x2a5   : > { %v911_v48 = vsel %vm898_vm4, %v2343_v47, 0.0 }
 0x2a6   : > { %912 = vadd.xlane.f32.xlu1 %v911_v48 }
 0x2a8   : > { %v2345_v49 = vpop.eup %2344 }
 0x2a9   : > { %v914_v50 = vsel %vm898_vm4, %v2345_v49, 0.0 }
 0x2aa   : > { %915 = vadd.xlane.f32.xlu1 %v914_v50 }
 0x2bb   : > { %1145 = vrot.lane.b32.xlu1 %v578_v26, %s2467_s2 }
 0x333   : > { %v913_v58 = vpop.xlane.xlu1 %912 }
 0x334   : > { %2346 = vrcp.f32 %v913_v58 }
 0x337   : > { %v916_v59 = vpop.xlane.xlu1 %915 }
 0x338   : > { %2348 = vrcp.f32 %v916_v59 }
 0x33b   : > { %v1146_v1 = vpop.permute.xlu1 %1145 }
 0x33e   : > { %v2347_v60 = vpop.eup %2346 }
 0x33f   : > { %v919_v61 = vmul.f32 %v2347_v60, %v2343_v47 }
 0x341   : > { %2160 = vmatmul.mubr.msk.f32.vlgmr.msra.gmra.mrb[2].mxu0 %vm898_vm4, %v919_v61  ;;  %v1616_v61 = vld [vmem:[%s2638_s1] sm:$0xff] }
 0x342   : > { %v2349_v63 = vpop.eup %2348  ;;  %2168 = vmatpush3.xpose.msk.msra.mxu0 %vm743_vm3, %v1070_v62  ;;  %2169 = vmatprep.mubr.msk.f32.mxu0 %vm2466_vm2, %v2465_v16  ;;  %v1617_v62 = vld [vmem:[%s2638_s1 + $0x8] sm:$0xff] }
 0x343   : > { %v920_v0 = vmul.f32 %v2349_v63, %v2345_v49  ;;  %2177 = vmatprep.subr.mxu0 %v2465_v16  ;;  %v2263_v63 = vpack.c.bf16 %v1617_v62, %v1616_v61 }
 0x345   : > { %2165 = vmatmul.mubr.msk.f32.vlgmr.msra.gmra.mrb[8].mxu1 %vm898_vm4, %v920_v0  ;;  %2170 = vmatmul.mubr.msk.f32.vlgmr.msra.gmra.mrb[4].mxu0 %vm743_vm3, %v1068_v57  ;;  %v1618_v0 = vld [vmem:[%s2638_s1 + $0x10] sm:$0xff] }
 0x346   : > { %2173 = vmatpush3.xpose.msk.msra.mxu1 %vm743_vm3, %v1148_v56  ;;  %2174 = vmatprep.mubr.msk.f32.mxu1 %vm2466_vm2, %v2465_v16 }
 0x347   : > { %2182 = vmatprep.subr.mxu1 %v2465_v16  ;;  %2179 = vmatprep.mubr.msk.f32.mxu0 %vm2466_vm2, %v2465_v16 }
 0x349   : > { %2175 = vmatmul.mubr.msk.f32.vlgmr.msra.gmra.mrb[10].mxu1 %vm743_vm3, %v1146_v1  ;;  %v1619_v1 = vld [vmem:[%s2638_s1 + $0x18] sm:$0xff] }
 0x34a   : > { %2184 = vmatprep.mubr.msk.f32.mxu1 %vm2466_vm2, %v2465_v16 }
 0x414   : > { %v990_v2 = vpop.f32.mrb[2].mxu0 }
 0x415   : > { %v2161_v3 = vpop.f32.mrb[3].mxu0 }
 0x416   : > { %v1710_v3 = vld [vmem:[%s2652_s26] sm:$0xff] }
 0x418   : > { %v1063_v4 = vpop.f32.mrb[8].mxu1  ;;  %v1141_v5 = vpop.f32.mrb[4].mxu0 }
 0x419   : > { %v1223_v6 = vmul.f32 0.25, %v1141_v5  ;;  %v2166_v8 = vpop.f32.mrb[9].mxu1  ;;  %v2171_v9 = vpop.f32.mrb[5].mxu0  ;;  %v1712_v5 = vld [vmem:[%s2652_s26 + $0x10] sm:$0xff] }
 0x41a   : > { %v1713_v8 = vld [vmem:[%s2652_s26 + $0x18] sm:$0xff] }
 0x41b   : > { %v1225_v10 = vsel %vm898_vm4, %v1223_v6, -inf  ;;  %v2275_v9 = vpack.c.bf16 %v1713_v8, %v1712_v5 }
 0x41c   : > { %1226 = vmax.xlane.f32.xlu0 %v1225_v10  ;;  %v1219_v11 = vpop.f32.mrb[10].mxu1  ;;  %v1714_v10 = vld [vmem:[%s2652_s26 + $0x20] sm:$0xff] }
 0x41d   : > { %v1224_v12 = vmul.f32 0.25, %v1219_v11  ;;  %v2176_v13 = vpop.f32.mrb[11].mxu1  ;;  %v1715_v11 = vld [vmem:[%s2652_s26 + $0x28] sm:$0xff] }
 0x41f   : > { %v1228_v15 = vsel %vm898_vm4, %v1224_v12, -inf }
 0x420   : > { %1229 = vmax.xlane.f32.xlu1 %v1228_v15 }
 0x431   : > { %1325 = vrot.lane.b32.xlu1 %v740_v54, %s2467_s2 }
 0x4a9   : > { %v1227_v17 = vpop.xlane.xlu0 %1226 }
 0x4aa   : > { %v1231_v16 = vsub.f32 %v1223_v6, %v1227_v17 }
 0x4ac   : > { %v1233_v18 = vmul.f32 1.442695, %v1231_v16 }
 0x4ad   : > { %v1230_v19 = vpop.xlane.xlu1 %1229 }
 0x4ae   : > { %2350 = vpow2.f32 %v1233_v18  ;;  %v1232_v20 = vsub.f32 %v1224_v12, %v1230_v19  ;;  %v2279_v12 = vpack.c.bf16 %v1715_v11, %v1714_v10 }
 0x4b0   : > { %v1235_v21 = vmul.f32 1.442695, %v1232_v20 }
 0x4b1   : > { %v1326_v22 = vpop.permute.xlu1 %1325 }
 0x4b2   : > { %2352 = vpow2.f32 %v1235_v21  ;;  %2183 = vmatpush3.msra.mxu1 %v1326_v22  ;;  %v2038_v21 = vld [vmem:[%s2627_s23] ss:$0 sm:$0xff] }
 0x4b3   : > { %2264 = vmatprep.subr.bf16.mxu1 %v2263_v63 }
 0x4b8   : > { %v2351_v23 = vpop.eup %2350 }
 0x4b9   : > { %v1237_v24 = vsel %vm898_vm4, %v2351_v23, 0.0 }
 0x4ba   : > { %1238 = vadd.xlane.f32.xlu0 %v1237_v24 }
 0x4bc   : > { %v2353_v25 = vpop.eup %2352 }
 0x4bd   : > { %v1240_v26 = vsel %vm898_vm4, %v2353_v25, 0.0 }
 0x4be   : > { %1241 = vadd.xlane.f32.xlu0 %v1240_v26 }
 0x4d4   : > { %1248 = vrot.lane.b32.xlu0 %v735_v55, %s2467_s2 }
 0x547   : > { %v1239_v27 = vpop.xlane.xlu0 %1238 }
 0x548   : > { %2354 = vrcp.f32 %v1239_v27 }
 0x54b   : > { %v1242_v28 = vpop.xlane.xlu0 %1241 }
 0x54c   : > { %2356 = vrcp.f32 %v1242_v28 }
 0x54f   : > { %v1249_v29 = vpop.permute.xlu0 %1248 }
 0x550   : > { %2178 = vmatpush3.msra.mxu0 %v1249_v29 }
 0x551   : > { %2256 = vmatprep.subr.bf16.mxu0 %v2255_v36 }
 0x552   : > { %v2355_v30 = vpop.eup %2354 }
 0x553   : > { %v1245_v31 = vmul.f32 %v2355_v30, %v2351_v23  ;;  %v1716_v30 = vld [vmem:[%s2652_s26 + $0x30] sm:$0xff] }
 0x555   : > { %2180 = vmatmul.mubr.msk.f32.vlgmr.msra.gmra.mrb[6].mxu0 %vm898_vm4, %v1245_v31  ;;  %v1717_v31 = vld [vmem:[%s2652_s26 + $0x38] sm:$0xff] }
 0x556   : > { %v2357_v32 = vpop.eup %2356  ;;  %2258 = vmatpush3.bf16.msra.mxu0 %v2255_v36 }
 0x557   : > { %v1246_v33 = vmul.f32 %v2357_v32, %v2353_v25  ;;  %2260 = vmatprep.subr.bf16.mxu0 %v2259_v39  ;;  %v2039_v25 = vld [vmem:[%s2632_s30] ss:$0 sm:$0xff]  ;;  %v2283_v32 = vpack.c.bf16 %v1717_v31, %v1716_v30 }
 0x559   : > { %2185 = vmatmul.mubr.msk.f32.vlgmr.msra.gmra.mrb[12].mxu1 %vm898_vm4, %v1246_v33  ;;  %v2040_v33 = vld [vmem:[%s449_s12] ss:$0 sm:$0xff] }
 0x55a   : > { %2266 = vmatpush3.bf16.msra.mxu1 %v2263_v63 }
 0x628   : > { %v1320_v40 = vpop.f32.mrb[6].mxu0 }
 0x629   : > { %v2181_v41 = vpop.f32.mrb[7].mxu0  ;;  %2191 = vmatprep.mubr.msk.f32.mxu0 %vm743_vm3, %v1320_v40  ;;  %v2043_v40 = vld [vmem:[%s457_s22] ss:$0 sm:$0xff] }
 0x62c   : > { %v1397_v42 = vpop.f32.mrb[12].mxu1 }
 0x62d   : > { %v2186_v43 = vpop.f32.mrb[13].mxu1  ;;  %2192 = vmatmul.mubr.msk.f32.vlgmr.msra.gmra.mrb[8].mxu0 %vm743_vm3, %v1397_v42 }
 0x62e   : > { %2262 = vmatpush3.bf16.msra.mxu0 %v2259_v39  ;;  %2198 = vmatprep.mubr.msk.f32.mxu0 %vm743_vm3, %v990_v2  ;;  %v2267_v2 = vpack.c.bf16 %v1619_v1, %v1618_v0  ;;  %v2046_v0 = vld [vmem:[%s2627_s23 + $0x1] ss:$0 sm:$0xff] }
 0x630   : > { %2268 = vmatprep.subr.bf16.mxu1 %v2267_v2 }
 0x631   : > { %2270 = vmatpush3.bf16.msra.mxu1 %v2267_v2 }
 0x635   : > { %2199 = vmatmul.mubr.msk.f32.vlgmr.msra.gmra.mrb[8].mxu0 %vm743_vm3, %v1063_v4  ;;  %v1711_v4 = vld [vmem:[%s2652_s26 + $0x8] sm:$0xff] }
 0x636   : > { %v2271_v6 = vpack.c.bf16 %v1711_v4, %v1710_v3  ;;  %v2047_v3 = vld [vmem:[%s2632_s30 + $0x1] ss:$0 sm:$0xff] }
 0x638   : > { %2272 = vmatprep.subr.bf16.mxu0 %v2271_v6 }
 0x639   : > { %2274 = vmatpush3.bf16.msra.mxu0 %v2271_v6 }
 0x63a   : > { %2276 = vmatprep.subr.bf16.mxu0 %v2275_v9 }
 0x63d   : > { %2278 = vmatpush3.bf16.msra.mxu0 %v2275_v9 }
 0x63e   : > { %2280 = vmatprep.subr.bf16.mxu0 %v2279_v12 }
 0x641   : > { %2282 = vmatpush3.bf16.msra.mxu0 %v2279_v12 }
 0x642   : > { %2284 = vmatprep.subr.bf16.mxu0 %v2283_v32 }
 0x645   : > { %2286 = vmatpush3.bf16.msra.mxu0 %v2283_v32 }
 0x708   : > { %v2200_v45 = vpop.f32.mrb[8].mxu0 }
 0x709   : > { %v1570_v46 = vadd.f32 %v2200_v45, %v2037_v44  ;;  %v1554_v47 = vpop.f32.mrb[9].mxu0 }
 0x70a   : > { %v1569_v48 = vadd.f32 %v2037_v44, %v1554_v47 }
 0x70b   : > { %v1572_v49 = vadd.f32 %v1570_v46, %v2675_v14 }
 0x70c   : > { %v1571_v50 = vadd.f32 %v1569_v48, %v2665_v7 }
 0x70d   : > { %v1576_v51 = vsel %vm499_vm1, %v1572_v49, 0.0 }
 0x70e   : > { %1577 = vadd.xlane.f32.xlu0 %v1576_v51  ;;  %v1573_v52 = vsel %vm499_vm1, %v1571_v50, 0.0 }
 0x70f   : > { %1574 = vadd.xlane.f32.xlu1 %v1573_v52 }
 0x79b   : > { %v1578_v53 = vpop.xlane.xlu0 %1577 }
 0x79c   : > { %v1581_v54 = vmul.f32 0.03125, %v1578_v53  ;;  %v1575_v55 = vpop.xlane.xlu1 %1574 }
 0x79d   : > { %v1580_v56 = vmul.f32 0.03125, %v1575_v55 }
 0x79e   : > { %v1583_v57 = vsub.f32 %v1572_v49, %v1581_v54 }
 0x79f   : > { %v1582_v58 = vsub.f32 %v1571_v50, %v1580_v56 }
 0x7a0   : > { %v1585_v59 = vmul.f32 %v1583_v57, %v1583_v57 }
 0x7a1   : > { %v1584_v14 = vmul.f32 %v1582_v58, %v1582_v58 }
 0x7a2   : > { %v1589_v7 = vsel %vm499_vm1, %v1585_v59, 0.0 }
 0x7a3   : > { %1590 = vadd.xlane.f32.xlu1 %v1589_v7  ;;  %v1586_v60 = vsel %vm499_vm1, %v1584_v14, 0.0 }
 0x7a4   : > { %1587 = vadd.xlane.f32.xlu0 %v1586_v60 }
 0x830   : > { %v1591_v13 = vpop.xlane.xlu1 %1590 }
 0x831   : > { %v1593_v15 = vmul.f32 0.03125, %v1591_v13  ;;  %v1588_v17 = vpop.xlane.xlu0 %1587 }
 0x832   : > { %v1592_v16 = vmul.f32 0.03125, %v1588_v17 }
 0x833   : > { %v1595_v18 = vadd.f32 1e-05, %v1593_v15 }
 0x834   : > { %v1594_v19 = vadd.f32 1e-05, %v1592_v16 }
 0x835   : > { %2358 = vrsqrt.f32 %v1595_v18 }
 0x836   : > { %2360 = vrsqrt.f32 %v1594_v19 }
 0x83f   : > { %v2359_v20 = vpop.eup %2358 }
 0x840   : > { %v2361_v22 = vpop.eup %2360  ;;  %v1599_v23 = vmul.f32 %v2359_v20, %v1583_v57 }
 0x841   : > { %v1598_v24 = vmul.f32 %v2361_v22, %v1582_v58 }
 0x842   : > { %v1607_v26 = vmul.f32 %v2038_v21, %v1599_v23 }
 0x843   : > { %v1606_v27 = vmul.f32 %v2038_v21, %v1598_v24 }
 0x844   : > { %v1615_v29 = vadd.f32 %v2039_v25, %v1607_v26 }
 0x845   : > { %v1614_v28 = vadd.f32 %v2039_v25, %v1606_v27 }
 0x847   : > { %2209 = vmatprep.mubr.msk.f32.mxu1 %vm499_vm1, %v1614_v28 }
 0x848   : > { %2210 = vmatmul.mubr.msk.f32.vlgmr.msra.gmra.mrb[14].mxu1 %vm499_vm1, %v1615_v29 }
 0x91b   : > { %v2211_v34 = vpop.f32.mrb[14].mxu1 }
 0x91c   : > { %v1705_v35 = vadd.f32 %v2211_v34, %v2040_v33  ;;  %v1699_v36 = vpop.f32.mrb[15].mxu1 }
 0x91d   : > { %v1700_v37 = vadd.f32 %v2040_v33, %v1699_v36 }
 0x91e   : > { %v1709_v39 = vmax.f32 %v1705_v35, 0.0 }
 0x91f   : > { %v1708_v38 = vmax.f32 %v1700_v37, 0.0 }
 0x921   : > { %2228 = vmatprep.mubr.msk.f32.mxu0 %vm1725_vm5, %v1708_v38 }
 0x922   : > { %2229 = vmatmul.mubr.msk.f32.vlgmr.msra.gmra.mrb[10].mxu0 %vm1725_vm5, %v1709_v39 }
 0x9f5   : > { %v2230_v41 = vpop.f32.mrb[10].mxu0 }
 0x9f6   : > { %v1804_v42 = vadd.f32 %v2230_v41, %v2043_v40  ;;  %v1798_v43 = vpop.f32.mrb[11].mxu0 }
 0x9f7   : > { %v1799_v44 = vadd.f32 %v2043_v40, %v1798_v43 }
 0x9f8   : > { %v1808_v45 = vadd.f32 %v1804_v42, %v1615_v29 }
 0x9f9   : > { %v1807_v46 = vadd.f32 %v1799_v44, %v1614_v28 }
 0x9fa   : > { %v1812_v47 = vsel %vm499_vm1, %v1808_v45, 0.0 }
 0x9fb   : > { %1813 = vadd.xlane.f32.xlu1 %v1812_v47  ;;  %v1809_v48 = vsel %vm499_vm1, %v1807_v46, 0.0 }
 0x9fc   : > { %1810 = vadd.xlane.f32.xlu0 %v1809_v48 }
 0xa88   : > { %v1814_v49 = vpop.xlane.xlu1 %1813 }
 0xa89   : > { %v1816_v50 = vmul.f32 0.03125, %v1814_v49  ;;  %v1811_v51 = vpop.xlane.xlu0 %1810 }
 0xa8a   : > { %v1815_v52 = vmul.f32 0.03125, %v1811_v51 }
 0xa8b   : > { %v1818_v53 = vsub.f32 %v1808_v45, %v1816_v50 }
 0xa8c   : > { %v1817_v54 = vsub.f32 %v1807_v46, %v1815_v52 }
 0xa8d   : > { %v1820_v55 = vmul.f32 %v1818_v53, %v1818_v53 }
 0xa8e   : > { %v1819_v56 = vmul.f32 %v1817_v54, %v1817_v54 }
 0xa8f   : > { %v1824_v57 = vsel %vm499_vm1, %v1820_v55, 0.0 }
 0xa90   : > { %1825 = vadd.xlane.f32.xlu1 %v1824_v57  ;;  %v1821_v58 = vsel %vm499_vm1, %v1819_v56, 0.0 }
 0xa91   : > { %1822 = vadd.xlane.f32.xlu0 %v1821_v58 }
 0xb1d   : > { %v1826_v59 = vpop.xlane.xlu1 %1825 }
 0xb1e   : > { %v1828_v14 = vmul.f32 0.03125, %v1826_v59  ;;  %v1823_v7 = vpop.xlane.xlu0 %1822 }
 0xb1f   : > { %v1827_v60 = vmul.f32 0.03125, %v1823_v7 }
 0xb20   : > { %v1830_v61 = vadd.f32 1e-05, %v1828_v14 }
 0xb21   : > { %v1829_v62 = vadd.f32 1e-05, %v1827_v60 }
 0xb22   : > { %2362 = vrsqrt.f32 %v1830_v61 }
 0xb23   : > { %2364 = vrsqrt.f32 %v1829_v62 }
 0xb2c   : > { %v2363_v63 = vpop.eup %2362 }
 0xb2d   : > { %v2365_v1 = vpop.eup %2364  ;;  %v1834_v2 = vmul.f32 %v2363_v63, %v1818_v53 }
 0xb2e   : > { %v1833_v4 = vmul.f32 %v2365_v1, %v1817_v54  ;;  %1856 = sbr.rel (%p2048_p8) target bundleno = 2869 (0xb35), region = 68 }
 0xb2f   : > { %v1842_v5 = vmul.f32 %v2046_v0, %v1834_v2 }
 0xb30   : > { %v1841_v6 = vmul.f32 %v2046_v0, %v1833_v4 }
 0xb31   : > { %v1850_v8 = vadd.f32 %v2047_v3, %v1842_v5 }
 0xb32   : > { %v1849_v9 = vadd.f32 %v2047_v3, %v1841_v6 }
 0xb33   : > { %1852 = vst.msk [vmem:[#allocation2 + $0x8] sm:$0xff] %vm499_vm1, %v1850_v8  ;;  %1858 = vst.msk [vmem:[#allocation6 + $0x8] sm:$0xff] (!%p2048_p8), %vm499_vm1, %v1850_v8 }
 0xb34   : > { %1851 = vst.msk [vmem:[#allocation2] sm:$0xff] %vm499_vm1, %v1849_v9  ;;  %1857 = vst.msk [vmem:[#allocation6] sm:$0xff] (!%p2048_p8), %vm499_vm1, %v1849_v9 }
 0xb35 PF: > { %p2300_p4 = scmp.eq.s32.totalorder %s2540_s13, 1  ;;  %s2468_s24 = smov [#allocation6]  }
 0xb36   : > { %s1865_s19 = sshll.u32 %s2468_s24, 4  ;;  %s1866_s19 = int_to_ptr.vmem [resolvable:$true] %s1865_s19 }
 0xb37   : > { %s2396_s23 = scalar_lea.vmem %s1866_s19, 256  ;;  %p2403_p12 = scmp.lt.s32.totalorder %s1866_s19, %s1866_s19 }
 0xb38   : > { %p2397_p5 = scmp.ne.s32.totalorder %s1866_s19, %s2396_s23  ;;  %p2404_p0 = scmp.lt.s32.totalorder %s2396_s23, %s2396_s23 }
 0xb3a   : > { %p2398_p6 = pnand %p2397_p5, %p2300_p4  ;;  %p2405_p1 = por %p2404_p0, %p2403_p12 }
 0xb3c   : > { %p2399_p10 = pneg %p2398_p6 }
 0xb3e   : > { %p2406_p2 = pnand %p2405_p1, %p2399_p10 }
 0xb40   : > { %2409 = shalt.err (!%p2406_p2)
}
 0xb41   : > { %s2410_s20 = scalar_lea.hbm %s2839_s9, 256 }
 0xb42   : > { %p2411_p11 = scmp.ne.s32.totalorder %s2839_s9, %s2410_s20  ;;  %p2416_p9 = scmp.lt.u32.totalorder %s2410_s20, %s2839_s9 }
 0xb44   : > { %p2412_p13 = pnand %p2411_p11, %p2300_p4 }
 0xb46   : > { %p2413_p3 = pneg %p2412_p13 }
 0xb48   : > { %p2418_p7 = pnand %p2416_p9, %p2413_p3 }
 0xb4a   : > { %2421 = shalt.err (!%p2418_p7)
}
 0xb4b   : > { %s2469_s22 = smov 128   ;;  %s2470_s26 = smov 8  }
 0xb4c   : > { %2292 = dma.vmem_to_hbm [thread:$0]  (%p2300_p4), %s1866_s19, 256, %s2839_s9, [#allocation5], %s2469_s22, %s2469_s22, %s2470_s26  }
 0xb4d   : > { %2443 = dma.done.wait (%p2300_p4), [#allocation5], 256  }
 0xb4e   : > { %2445 = vsyncadd (%p2300_p4), [#allocation5], 4294967040 }
 0xb4f PF: > { %s2852_s17 = sld [smem:[#allocation9_spill]]  ;;  %s2853_s11 = sld [smem:[#allocation10_spill]] }
 0xb50   : > { %p20_p8 = scmp.ge.s32.totalorder %s2543_s14, 4   ;;  %s2854_s30 = smov %s2452_s10 }
 0xb51   : > { %s2856_s12 = smov %s2543_s14 }
 0xb52   :  { %22 = sbr.rel (!%p20_p8) target bundleno = 8 (0x8), region = 122 }
 0xb55   : > { %s2855_s10 = smov %s2852_s17 }
 0xb59   :  { %1881 = vsyncpa [#allocation4], 1 }
 0xb5a   :  { %1883 = vsyncpa [#allocation4 + $0x1], 1 }
 0xb5b   :  { %1884 = vsyncpa [#allocation5], 1 }
 0xb5c   :  { %1886 = vsyncpa [#allocation5 + $0x1], 1 }

</bundles_post_ra>
